<compile_context>
chip_gen: v7x
topology: tpu7x:2x2x1
jax: 0.10.0
libtpu: 0.0.40
codegen_flags: <defaults>
</compile_context>

<pallas_src>
from dataclasses import dataclass

import numpy as np
import jax
import jax.numpy as jnp
from jax.experimental import pallas as pl
from jax.experimental.pallas import tpu as pltpu


@dataclass
class LossConfig:
    policy_weight: float = 1.0
    value_weight: float = 1.0
    entropy_weight: float = 0.01
    mse_weight: float = 1.0
    kl_weight: float = 0.1
    pag_weight: float = 2.0
    graph_weight: float = 1.0
    king_safety_weight: float = 1.5
    center_control_weight: float = 1.0
    material_balance_weight: float = 5.0
    piece_coordination_weight: float = 1.0
    attack_pattern_weight: float = 1.5


_HANG_COL, _ACT_COL, _COORD_COL, _TAC_COL = 0, 1, 2, 3
_NUM_METRICS = 4
_LANES = 128
_ROW_TILE = 1024  # rows of B*P per grid step


def _round_up(x, m):
    return ((x + m - 1) // m) * m


def _build_selection_matrix(d):
    """(d, 128) constant: col0 = e_60 (hanging score), cols 1-3 = window-mean masks."""
    m = np.zeros((d, _LANES), dtype=np.float32)
    m[60, _HANG_COL] = 1.0                 # tactical vulnerability feature 60
    m[132:146, _ACT_COL] = 1.0 / 14.0      # positional activity window (abs 132:146)
    m[94:112, _COORD_COL] = 1.0 / 18.0     # positional coordination window (abs 94:112)
    m[20:52, _TAC_COL] = 1.0 / 32.0        # tactical motif+threat window (abs 20:52)
    return m


# ---------------------------------------------------------------------------
# Pallas kernel: per-piece PAG terms, row-tiled over B*P, reduced in-kernel
# ---------------------------------------------------------------------------
def _make_piece_kernel(tile, bp):
    def kernel(feat_ref, msel_ref, out_ref):
        i = pl.program_id(0)
        x = feat_ref[...]                                        # (tile, D)

        # Windowed means + feature-60 pick on the MXU in bf16 (f32 accumulate).
        sel = jnp.dot(x.astype(jnp.bfloat16), msel_ref[...],
                      preferred_element_type=jnp.float32)        # (tile, 128)
        # Squared L2 norm: cross-lane reduce on the otherwise-idle XLU.
        xf = x.astype(jnp.float32)
        nrm = jnp.sum(xf * xf, axis=1, keepdims=True)            # (tile, 1)

        metrics = jax.nn.sigmoid(sel)                            # lanes 0..3 = metrics
        piece_val = jax.nn.sigmoid(jnp.sqrt(nrm))                # (tile, 1)

        lane = jax.lax.broadcasted_iota(jnp.int32, (1, _LANES), 1)
        # lane 0: hanging = sigmoid(feat60)*sigmoid(||x||)*20; lanes 1..3 plain
        # sigmoids; lanes >= 4 zeroed.
        factor = jnp.where(lane == _HANG_COL, piece_val * 20.0,
                           jnp.where(lane < _NUM_METRICS, 1.0, 0.0))
        combined = metrics * factor                              # (tile, 128)

        last = pl.num_programs(0) - 1

        @pl.when(i < last)
        def _():  # hot path: all rows in-bounds, no mask math
            psum = jnp.sum(combined, axis=0, keepdims=True)
            out_ref[...] = jnp.broadcast_to(psum, (8, _LANES))   # lane-dense store

        @pl.when(i == last)
        def _():  # only the final tile may read past the end of the row axis
            row = jax.lax.broadcasted_iota(jnp.int32, (tile, _LANES), 0) + i * tile
            masked = jnp.where(row < bp, combined, 0.0)          # select, not multiply
            psum = jnp.sum(masked, axis=0, keepdims=True)
            out_ref[...] = jnp.broadcast_to(psum, (8, _LANES))

    return kernel


def _run_piece_kernel(feat2d, bp, tile):
    _, d = feat2d.shape
    num_tiles = pl.cdiv(bp, tile)
    msel = jnp.asarray(_build_selection_matrix(d), dtype=jnp.bfloat16)

    out = pl.pallas_call(
        _make_piece_kernel(tile, bp),
        out_shape=jax.ShapeDtypeStruct((num_tiles * 8, _LANES), jnp.float32),
        grid=(num_tiles,),
        in_specs=[
            pl.BlockSpec((tile, d), lambda i: (i, 0)),      # row-tiled features
            pl.BlockSpec((d, _LANES), lambda i: (0, 0)),    # constant selection matrix
        ],
        out_specs=pl.BlockSpec((8, _LANES), lambda i: (i, 0)),
        compiler_params=pltpu.CompilerParams(
            dimension_semantics=("parallel",),              # 2-TC sharding on v7x
            vmem_limit_bytes=32 * 1024 * 1024,
        ),
    )(feat2d, msel)

    # All 8 sublanes of each tile block hold identical partials; take sublane 0.
    partial = out.reshape(num_tiles, 8, _LANES)[:, 0, :_NUM_METRICS]
    return jnp.sum(partial, axis=0)  # (4,) sums over all valid B*P rows


# ---------------------------------------------------------------------------
# Forward pass (mirrors UltraDensePAGLoss.forward), jitted, no host syncs
# ---------------------------------------------------------------------------
def _forward_impl(policy_pred, value_pred, piece_features, policy_target,
                  value_target, weights):
    (w_policy, w_value, w_material, w_coord, w_king, w_attack) = weights
    B, P, D = piece_features.shape

    # ---- per-piece PAG terms ------------------------------------------------
    bp = B * P
    feat2d = piece_features.reshape(bp, D)
    if feat2d.dtype != jnp.bfloat16:        # keep bf16 inputs at half HBM bytes
        feat2d = feat2d.astype(jnp.float32)
    tile = min(_ROW_TILE, _round_up(bp, 8))
    sums = _run_piece_kernel(feat2d, bp, tile)     # (4,) totals over all pieces

    # mean over batch of (sum over pieces)  ==  total sum / B
    hanging_penalty = sums[_HANG_COL] / B
    activity_bonus = sums[_ACT_COL] / B
    coordination_bonus = sums[_COORD_COL] / B
    tactical_bonus = sums[_TAC_COL] / B

    # ---- policy CE / value MSE: tiny [B, A] ops, left to fused XLA inside the
    # same jit (per perf review: saves a kernel-launch and 1-lane masked stores).
    logits = policy_pred.astype(jnp.float32)
    logz = jax.scipy.special.logsumexp(logits, axis=1)
    tgt_logit = jnp.take_along_axis(
        logits, policy_target.reshape(B, 1).astype(jnp.int32), axis=1)[:, 0]
    policy_loss = jnp.mean(logz - tgt_logit)
    vdiff = (value_pred.reshape(-1).astype(jnp.float32)
             - value_target.reshape(-1).astype(jnp.float32))
    value_loss = jnp.mean(vdiff * vdiff)

    # ---- king safety: the PyTorch module takes the mean of an EMPTY slice
    # (strategic[..., -144:-132] on a size-60 axis) => NaN.  Emit the NaN constant
    # directly rather than re-streaming piece_features from HBM to compute it.
    # TODO(synk): confirm with the loss owner whether this should be 0 instead;
    # as specified it poisons total_loss (behavior is faithful to the module).
    king_safety_loss = jnp.float32(jnp.nan)

    total_loss = (w_policy * policy_loss
                  + w_value * value_loss
                  + w_material * hanging_penalty
                  + w_coord * (-coordination_bonus)
                  + w_king * king_safety_loss
                  + w_attack * (-tactical_bonus)
                  + (-activity_bonus) * 0.5)

    return (total_loss, policy_loss, value_loss, hanging_penalty, activity_bonus,
            king_safety_loss, coordination_bonus, tactical_bonus)


_forward = jax.jit(_forward_impl)


def ultra_dense_pag_loss(policy_pred, value_pred, pag_features, policy_target,
                         value_target, board_states=None, model=None, config=None):
    # TODO(synk): handle the missing-'piece_features' branch of the PyTorch forward
    # (all PAG terms zero); this path assumes piece_features is present.
    cfg = config or LossConfig()
    piece_features = pag_features['piece_features']
    weights = (cfg.policy_weight, cfg.value_weight, cfg.material_balance_weight,
               cfg.piece_coordination_weight, cfg.king_safety_weight,
               cfg.attack_pattern_weight)
    (total_loss, policy_loss, value_loss, hanging_penalty, activity_bonus,
     king_safety_loss, coordination_bonus, tactical_bonus) = _forward(
        policy_pred, value_pred, piece_features, policy_target, value_target, weights)
    components = {
        'policy_loss': policy_loss,
        'value_loss': value_loss,
        'hanging_penalty': hanging_penalty,
        'activity_bonus': activity_bonus,
        'king_safety_loss': king_safety_loss,
        'coordination_bonus': coordination_bonus,
        'tactical_bonus': tactical_bonus,
        'total_loss': total_loss,
    }
    return total_loss, components


# ---------------------------------------------------------------------------
# Pure-JAX reference (sanity check of the finite components)
# ---------------------------------------------------------------------------
def _reference_components(policy_pred, value_pred, piece_features, policy_target,
                          value_target):
    x = piece_features.astype(jnp.float32)
    hanging = jnp.mean(jnp.sum(
        jax.nn.sigmoid(x[:, :, 60]) *
        jax.nn.sigmoid(jnp.linalg.norm(x, axis=2)) * 20.0, axis=1))
    activity = jnp.mean(jnp.sum(jax.nn.sigmoid(jnp.mean(x[:, :, 132:146], axis=2)), axis=1))
    coord = jnp.mean(jnp.sum(jax.nn.sigmoid(jnp.mean(x[:, :, 94:112], axis=2)), axis=1))
    tactical = jnp.mean(jnp.sum(jax.nn.sigmoid(jnp.mean(x[:, :, 20:52], axis=2)), axis=1))
    logits = policy_pred.astype(jnp.float32)
    logz = jax.scipy.special.logsumexp(logits, axis=1)
    ce = jnp.mean(logz - jnp.take_along_axis(logits, policy_target[:, None], axis=1)[:, 0])
    mse = jnp.mean((value_pred.astype(jnp.float32) - value_target.astype(jnp.float32)) ** 2)
    return ce, mse, hanging, activity, coord, tactical


if __name__ == "__main__":
    B, P, D, A = 2, 8, 308, 64
    key = jax.random.PRNGKey(0)
    k1, k2, k3, k4, k5 = jax.random.split(key, 5)
    piece_features = jax.random.normal(k1, (B, P, D), dtype=jnp.float32)
    policy_pred = jax.random.normal(k2, (B, A), dtype=jnp.float32)
    policy_target = jax.random.randint(k3, (B,), 0, A)
    value_pred = jax.random.normal(k4, (B,), dtype=jnp.float32)
    value_target = jax.random.uniform(k5, (B,), minval=-1.0, maxval=1.0, dtype=jnp.float32)

    total_loss, components = ultra_dense_pag_loss(
        policy_pred, value_pred, {'piece_features': piece_features},
        policy_target, value_target)
    jax.block_until_ready(total_loss)

    # Sanity-check the finite components against pure JAX (total is NaN by module
    # design because of the empty king-safety slice).
    ref = _reference_components(policy_pred, value_pred, piece_features,
                                policy_target, value_target)
    got = (components['policy_loss'], components['value_loss'],
           components['hanging_penalty'], components['activity_bonus'],
           components['coordination_bonus'], components['tactical_bonus'])
    for g, r in zip(got, ref):
        np.testing.assert_allclose(np.asarray(g), np.asarray(r), rtol=2e-3, atol=2e-3)

    print("KERNEL_OK")
</pallas_src>

<mosaic_0001>
module attributes {stable_mosaic.version = 11 : i64} {
  func.func @kernel(%arg0: i32, %arg1: memref<16x308xf32, #tpu.memory_space<vmem>>, %arg2: memref<308x128xbf16, #tpu.memory_space<vmem>>, %arg3: memref<8x128xf32, #tpu.memory_space<vmem>>) attributes {dimension_semantics = [#tpu.dimension_semantics<parallel>], iteration_bounds = array<i64: 1>, scalar_prefetch = 0 : i64, scratch_operands = 0 : i64, tpu.core_type = #tpu.core_type<tc>, window_params = [{transform_indices = @transform_0, window_bounds = array<i64: 16, 308>}, {pipeline_mode = #tpu.pipeline_mode<synchronous>, transform_indices = @transform_1, window_bounds = array<i64: 308, 128>}, {transform_indices = @transform_2, window_bounds = array<i64: 8, 128>}]} {
    %c0 = arith.constant 0 : index
    %c0_0 = arith.constant 0 : index
    %0 = vector.load %arg1[%c0, %c0_0] : memref<16x308xf32, #tpu.memory_space<vmem>>, vector<16x308xf32>
    %1 = arith.truncf %0 : vector<16x308xf32> to vector<16x308xbf16>
    %c0_1 = arith.constant 0 : index
    %c0_2 = arith.constant 0 : index
    %2 = vector.load %arg2[%c0_1, %c0_2] : memref<308x128xbf16, #tpu.memory_space<vmem>>, vector<308x128xbf16>
    %cst = arith.constant dense<0.000000e+00> : vector<16x128xf32>
    %3 = tpu.matmul %1, %2, %cst {dimension_numbers = #tpu.dot_dimension_numbers<[1], [0], [0], [1], [0, 0, 1, 1], [], []>} : vector<16x308xbf16>, vector<308x128xbf16>, vector<16x128xf32> -> vector<16x128xf32>
    %4 = arith.mulf %0, %0 : vector<16x308xf32>
    %cst_3 = arith.constant dense<0.000000e+00> : vector<16xf32>
    %5 = vector.multi_reduction <add>, %4, %cst_3 [1] : vector<16x308xf32> to vector<16xf32>
    %6 = vector.shape_cast %5 : vector<16xf32> to vector<16x1xf32>
    %7 = arith.negf %3 : vector<16x128xf32>
    %8 = math.exp %7 : vector<16x128xf32>
    %cst_4 = arith.constant 1.000000e+00 : f32
    %9 = vector.broadcast %cst_4 : f32 to vector<16x128xf32>
    %10 = arith.addf %9, %8 : vector<16x128xf32>
    %11 = arith.divf %9, %10 : vector<16x128xf32>
    %12 = math.sqrt %6 : vector<16x1xf32>
    %13 = arith.negf %12 : vector<16x1xf32>
    %14 = math.exp %13 : vector<16x1xf32>
    %cst_5 = arith.constant 1.000000e+00 : f32
    %15 = vector.broadcast %cst_5 : f32 to vector<16x1xf32>
    %16 = arith.addf %15, %14 : vector<16x1xf32>
    %17 = arith.divf %15, %16 : vector<16x1xf32>
    %18 = tpu.iota {dimensions = array<i32: 1>} : vector<1x128xi32>
    %c0_i32 = arith.constant 0 : i32
    %19 = vector.broadcast %c0_i32 : i32 to vector<1x128xi32>
    %20 = arith.cmpi eq, %18, %19 : vector<1x128xi32>
    %cst_6 = arith.constant 2.000000e+01 : f32
    %21 = vector.broadcast %cst_6 : f32 to vector<16x1xf32>
    %22 = arith.mulf %17, %21 : vector<16x1xf32>
    %c4_i32 = arith.constant 4 : i32
    %23 = vector.broadcast %c4_i32 : i32 to vector<1x128xi32>
    %24 = arith.cmpi slt, %18, %23 : vector<1x128xi32>
    %cst_7 = arith.constant 1.000000e+00 : f32
    %cst_8 = arith.constant 0.000000e+00 : f32
    %25 = vector.broadcast %cst_7 : f32 to vector<1x128xf32>
    %26 = vector.broadcast %cst_8 : f32 to vector<1x128xf32>
    %27 = arith.select %24, %25, %26 : vector<1x128xi1>, vector<1x128xf32>
    %28 = vector.shape_cast %20 : vector<1x128xi1> to vector<1x128xi1>
    %29 = vector.broadcast %28 : vector<1x128xi1> to vector<16x128xi1>
    %30 = vector.shape_cast %22 : vector<16x1xf32> to vector<16x1xf32>
    %31 = vector.broadcast %30 : vector<16x1xf32> to vector<16x128xf32>
    %32 = vector.shape_cast %27 : vector<1x128xf32> to vector<1x128xf32>
    %33 = vector.broadcast %32 : vector<1x128xf32> to vector<16x128xf32>
    %34 = arith.select %29, %31, %33 : vector<16x128xi1>, vector<16x128xf32>
    %35 = arith.mulf %11, %34 : vector<16x128xf32>
    %c0_i32_9 = arith.constant 0 : i32
    %36 = arith.cmpi slt, %arg0, %c0_i32_9 : i32
    %37 = arith.extui %36 : i1 to i32
    %c0_i32_10 = arith.constant 0 : i32
    %38 = arith.cmpi ne, %37, %c0_i32_10 : i32
    scf.if %38 {
      %cst_13 = arith.constant dense<0.000000e+00> : vector<128xf32>
      %42 = vector.multi_reduction <add>, %35, %cst_13 [0] : vector<16x128xf32> to vector<128xf32>
      %43 = vector.shape_cast %42 : vector<128xf32> to vector<1x128xf32>
      %44 = vector.shape_cast %43 : vector<1x128xf32> to vector<1x128xf32>
      %45 = vector.broadcast %44 : vector<1x128xf32> to vector<8x128xf32>
      %c0_14 = arith.constant 0 : index
      %c0_15 = arith.constant 0 : index
      %46 = vector.load %arg3[%c0_14, %c0_15] : memref<8x128xf32, #tpu.memory_space<vmem>>, vector<8x128xf32>
      tpu.vector_store %arg3[%c0_14, %c0_15], %45 {strides = array<i32>} : memref<8x128xf32, #tpu.memory_space<vmem>>, vector<8x128xf32>,
    } else {
    }
    %c0_i32_11 = arith.constant 0 : i32
    %39 = arith.cmpi eq, %arg0, %c0_i32_11 : i32
    %40 = arith.extui %39 : i1 to i32
    %c0_i32_12 = arith.constant 0 : i32
    %41 = arith.cmpi ne, %40, %c0_i32_12 : i32
    scf.if %41 {
      %42 = tpu.iota {dimensions = array<i32: 0>} : vector<16x128xi32>
      %c16_i32 = arith.constant 16 : i32
      %43 = arith.muli %arg0, %c16_i32 : i32
      %44 = vector.broadcast %43 : i32 to vector<16x128xi32>
      %45 = arith.addi %42, %44 : vector<16x128xi32>
      %c16_i32_13 = arith.constant 16 : i32
      %46 = vector.broadcast %c16_i32_13 : i32 to vector<16x128xi32>
      %47 = arith.cmpi slt, %45, %46 : vector<16x128xi32>
      %cst_14 = arith.constant 0.000000e+00 : f32
      %48 = vector.broadcast %cst_14 : f32 to vector<16x128xf32>
      %49 = arith.select %47, %35, %48 : vector<16x128xi1>, vector<16x128xf32>
      %cst_15 = arith.constant dense<0.000000e+00> : vector<128xf32>
      %50 = vector.multi_reduction <add>, %49, %cst_15 [0] : vector<16x128xf32> to vector<128xf32>
      %51 = vector.shape_cast %50 : vector<128xf32> to vector<1x128xf32>
      %52 = vector.shape_cast %51 : vector<1x128xf32> to vector<1x128xf32>
      %53 = vector.broadcast %52 : vector<1x128xf32> to vector<8x128xf32>
      %c0_16 = arith.constant 0 : index
      %c0_17 = arith.constant 0 : index
      %54 = vector.load %arg3[%c0_16, %c0_17] : memref<8x128xf32, #tpu.memory_space<vmem>>, vector<8x128xf32>
      tpu.vector_store %arg3[%c0_16, %c0_17], %53 {strides = array<i32>} : memref<8x128xf32, #tpu.memory_space<vmem>>, vector<8x128xf32>,
    } else {
    }
    return
  }
  func.func @transform_0(%arg0: i32) -> (i32, i32) {
    %c0_i32 = arith.constant 0 : i32
    %c0_i32_0 = arith.constant 0 : i32
    return %arg0, %c0_i32 : i32, i32
  }
  func.func @transform_1(%arg0: i32) -> (i32, i32) {
    %c0_i32 = arith.constant 0 : i32
    %c0_i32_0 = arith.constant 0 : i32
    %c0_i32_1 = arith.constant 0 : i32
    return %c0_i32, %c0_i32_0 : i32, i32
  }
  func.func @transform_2(%arg0: i32) -> (i32, i32) {
    %c0_i32 = arith.constant 0 : i32
    %c0_i32_0 = arith.constant 0 : i32
    return %arg0, %c0_i32 : i32, i32
  }
}

</mosaic_0001>

<bundles_post_ra>
// kernel: _forward_impl.1
= control target key start
LH: loop header
LB: loop body
LE: loop exit
PB: predicated region body
PF: predicated region fallthrough
CT: control target
= control target key end

     0   :  { %v479_v1 = vmov 0.0   ;;  %vm480_vm0 = vmmov 0   ;;  %vm181_vm1 = vcmask 1041408   ;;  %vm177_vm2 = vcmask 424960   ;;  %s583_s1 = inlined_call_operand.vmem [shape: bf16[308,128], index: 1, kind: input, shape index: {}]   ;;  %s584_s0 = inlined_call_operand.vmem [shape: f32[16,308], index: 0, kind: input, shape index: {}]   ;;  %s585_s2 = inlined_call_operand.vmem [shape: f32[8,128], index: 2, kind: output, shape index: {}]  }
   0x1   :  { %v439_v0 = vld [vmem:[%s583_s1 + $0x40] sm:$0xff]   ;;  %425 = vmatprep.subr.bf16.mxu1 %v479_v1  ;;  %433 = vmatprep.mubr.msk.bf16.mxu1 %vm480_vm0, %v479_v1  ;;  %v441_v3 = vld [vmem:[%s583_s1 + $0x48] sm:$0xff]   ;;  %v443_v5 = vld [vmem:[%s583_s1 + $0x50] sm:$0xff]  }
   0x2   :  { %v440_v2 = vld [vmem:[%s583_s1] sm:$0xff]   ;;  %398 = vmatprep.subr.bf16.mxu0 %v439_v0  ;;  %v442_v4 = vld [vmem:[%s583_s1 + $0x8] sm:$0xff]   ;;  %v444_v6 = vld [vmem:[%s583_s1 + $0x10] sm:$0xff]  }
   0x3   :  { %399 = vmatpush3.bf16.msra.mxu0 %v440_v2  ;;  %v445_v7 = vld [vmem:[%s583_s1 + $0x58] sm:$0xff]   ;;  %v449_v8 = vld [vmem:[%s583_s1 + $0x80] sm:$0xff]   ;;  %v452_v11 = vld [vmem:[%s583_s1 + $0x88] sm:$0xff]  }
   0x4   :  { %400 = vmatprep.subr.bf16.mxu0 %v441_v3  ;;  %v446_v9 = vld [vmem:[%s583_s1 + $0x18] sm:$0xff]   ;;  %v447_v10 = vld [vmem:[%s583_s1 + $0x60] sm:$0xff]   ;;  %426 = vmatpush3.bf16.msra.mxu1 %v449_v8  ;;  %v450_v13 = vld [vmem:[%s583_s1 + $0x68] sm:$0xff]  }
   0x5   :  { %427 = vmatprep.subr.bf16.mxu1 %v479_v1  ;;  %v448_v12 = vld [vmem:[%s583_s1 + $0x20] sm:$0xff]   ;;  %v455_v14 = vld [vmem:[%s583_s1 + $0x90] sm:$0xff]   ;;  %v451_v15 = vld [vmem:[%s583_s1 + $0x28] sm:$0xff]  }
   0x6   :  { %v458_v16 = vld [vmem:[%s583_s1 + $0x98] ss:$0 sps:$4 sm:$0x33]   ;;  %v13_v17 = vld [vmem:[%s584_s0 + $0x8] sm:$0xff]  ;;  %v453_v18 = vld [vmem:[%s583_s1 + $0x70] sm:$0xff]  }
   0x7   :  { %401 = vmatpush3.bf16.msra.mxu0 %v442_v4  ;;  %v16_v19 = vld [vmem:[%s584_s0 + $0x20] sm:$0xff]  ;;  %v268_v20 = vmul.f32 %v13_v17, %v13_v17  ;;  %v183_v22 = vsel %vm181_vm1, %v458_v16, 0  ;;  %v15_v25 = vld [vmem:[%s584_s0 + $0x18] sm:$0xff]  ;;  %v14_v26 = vld [vmem:[%s584_s0 + $0x10] sm:$0xff] }
   0x8   :  { %402 = vmatprep.subr.bf16.mxu0 %v443_v5  ;;  %428 = vmatpush3.bf16.msra.mxu1 %v452_v11  ;;  %v12_v21 = vld [vmem:[%s584_s0] sm:$0xff]  ;;  %v19_v23 = vpack.c.bf16 %v16_v19, %v13_v17  ;;  %v271_v24 = vmul.f32 %v16_v19, %v16_v19  ;;  %v17_v27 = vld [vmem:[%s584_s0 + $0x28] sm:$0xff]  ;;  %v269_v29 = vmul.f32 %v14_v26, %v14_v26  ;;  %v454_v31 = vld [vmem:[%s583_s1 + $0x30] sm:$0xff]  }
   0x9   :  { %429 = vmatprep.subr.bf16.mxu1 %v479_v1  ;;  %v267_v28 = vmul.f32 %v12_v21, %v12_v21  ;;  %v270_v30 = vmul.f32 %v15_v25, %v15_v25  ;;  %v20_v32 = vpack.c.bf16 %v17_v27, %v14_v26  ;;  %v272_v33 = vmul.f32 %v17_v27, %v17_v27  ;;  %v456_v34 = vld [vmem:[%s583_s1 + $0x78] sm:$0xff]  }
   0xa   :  { %217 = vmatprep.mubr.bf16.mxu0 %v19_v23  ;;  %v274_v36 = vsel %vm177_vm2, %v269_v29, 0.0  ;;  %v457_v40 = vld [vmem:[%s583_s1 + $0x38] sm:$0xff]   ;;  %v18_v42 = vpack.c.bf16 %v15_v25, %v12_v21 }
   0xb   :  { %403 = vmatpush3.bf16.msra.mxu0 %v444_v6  ;;  %v273_v35 = vadd.f32 %v268_v20, %v267_v28  ;;  %v278_v37 = vadd.f32 %v271_v24, %v270_v30  ;;  %v279_v38 = vsel %vm177_vm2, %v272_v33, 0.0 }
   0xc   :  { %404 = vmatprep.subr.bf16.mxu0 %v445_v7  ;;  %430 = vmatpush3.bf16.msra.mxu1 %v455_v14 }
   0xd   :  { %431 = vmatprep.subr.bf16.mxu1 %v479_v1  ;;  %v275_v39 = vadd.f32 %v274_v36, %v273_v35  ;;  %v280_v41 = vadd.f32 %v279_v38, %v278_v37 }
   0xf   :  { %405 = vmatpush3.bf16.msra.mxu0 %v446_v9  ;;  %276 = vadd.xlane.f32.xlu0 %v275_v39 }
  0x10   :  { %406 = vmatprep.subr.bf16.mxu0 %v447_v10  ;;  %432 = vmatpush3.bf16.msra.mxu1 %v183_v22 }
  0x13   :  { %407 = vmatpush3.bf16.msra.mxu0 %v448_v12  ;;  %434 = vmatmul.mubr.msk.bf16.vlgmr.msra.gmra.mrb[0].mxu1 %vm177_vm2, %v20_v32  ;;  %v321_v12 = vlaneseq }
  0x14   :  { %408 = vmatprep.subr.bf16.mxu0 %v450_v13  ;;  %281 = vadd.xlane.f32.xlu0 %v280_v41 }
  0x15   :  { %v322_v16 = vand.u32 127, %v321_v12 }
  0x17   :  { %409 = vmatpush3.bf16.msra.mxu0 %v451_v15  ;;  %vm326_vm7 = vcmp.lt.s32.totalorder %v322_v16, 4  ;;  %vm323_vm8 = vcmp.eq.s32.totalorder %v322_v16, 0 }
  0x18   :  { %410 = vmatprep.subr.bf16.mxu0 %v453_v18  ;;  %v327_v21 = vsel %vm326_vm7, 1.0, %v479_v1 }
  0x1b   :  { %411 = vmatpush3.bf16.msra.mxu0 %v454_v31 }
  0x1c   :  { %412 = vmatprep.subr.bf16.mxu0 %v456_v34 }
  0x1f   :  { %413 = vmatpush3.bf16.msra.mxu0 %v457_v40 }
  0x22   :  { %218 = vmatmul.mubr.bf16.vlgmr.msra.gmra.mrb[0].mxu0 %v18_v42 }
  0x9c   :  { %v277_v43 = vpop.xlane.xlu0 %276 }
  0x9d   :  { %459 = vrsqrt.f32 %v277_v43  ;;  %vm297_vm3 = vcmp.eq.f32.partialorder %v277_v43, inf  ;;  %v300_v49 = vand.u32 2147483648, %v277_v43  ;;  %vm299_vm5 = vcmp.eq.f32.partialorder %v277_v43, 0.0 }
  0xa1   :  { %v282_v44 = vpop.xlane.xlu0 %281 }
  0xa2   :  { %461 = vrsqrt.f32 %v282_v44  ;;  %vm304_vm4 = vcmp.eq.f32.partialorder %v282_v44, inf  ;;  %v307_v51 = vand.u32 2147483648, %v282_v44  ;;  %vm306_vm6 = vcmp.eq.f32.partialorder %v282_v44, 0.0 }
  0xa7   :  { %v460_v45 = vpop.eup %459 }
  0xa8   :  { %v296_v47 = vmul.f32 %v460_v45, %v277_v43 }
  0xaa   :  { %v298_v50 = vsel %vm297_vm3, %v277_v43, %v296_v47 }
  0xab   :  { %v301_v53 = vsel %vm299_vm5, %v300_v49, %v298_v50 }
  0xac   :  { %v462_v46 = vpop.eup %461  ;;  %v396_v55 = vmul.f32 -1.442695, %v301_v53 }
  0xad   :  { %v303_v48 = vmul.f32 %v462_v46, %v282_v44 }
  0xae   :  { %463 = vpow2.f32 %v396_v55 }
  0xaf   :  { %v305_v52 = vsel %vm304_vm4, %v282_v44, %v303_v48 }
  0xb0   :  { %v308_v54 = vsel %vm306_vm6, %v307_v51, %v305_v52 }
  0xb1   :  { %v397_v58 = vmul.f32 -1.442695, %v308_v54 }
  0xb3   :  { %465 = vpow2.f32 %v397_v58 }
  0xb8   :  { %v464_v7 = vpop.eup %463 }
  0xb9   :  { %v315_v10 = vadd.f32 1.0, %v464_v7 }
  0xbd   :  { %v466_v9 = vpop.eup %465 }
  0xbe   :  { %v316_v11 = vadd.f32 1.0, %v466_v9 }
  0xe6   :  { %v260_v56 = vpop.f32.mrb[0].mxu1 }
  0xe7   :  { %v435_v57 = vpop.f32.mrb[1].mxu1 }
  0xe8   :  { %v263_v59 = vpop.f32.mrb[2].mxu1 }
  0xe9   :  { %v436_v60 = vpop.f32.mrb[3].mxu1 }
  0xf5   :  { %v414_v61 = vpop.f32.mrb[0].mxu0 }
  0xf6   :  { %v415_v62 = vpop.f32.mrb[1].mxu0 }
  0xf7   :  { %v416_v63 = vadd.f32 %v415_v62, %v414_v61  ;;  %v417_v0 = vpop.f32.mrb[2].mxu0 }
  0xf8   :  { %v418_v2 = vpop.f32.mrb[3].mxu0 }
  0xf9   :  { %v261_v3 = vadd.f32 %v416_v63, %v260_v56  ;;  %v419_v4 = vadd.f32 %v418_v2, %v417_v0 }
  0xfb   :  { %v394_v5 = vmul.f32 -1.442695, %v261_v3  ;;  %v264_v6 = vadd.f32 %v419_v4, %v263_v59 }
  0xfd   :  { %467 = vpow2.f32 %v394_v5  ;;  %v395_v8 = vmul.f32 -1.442695, %v264_v6 }
  0xff   :  { %469 = vpow2.f32 %v395_v8 }
 0x100   :  { %471 = vrcp.f32 %v315_v10 }
 0x101   :  { %473 = vrcp.f32 %v316_v11 }
 0x107   :  { %v468_v13 = vpop.eup %467 }
 0x108   :  { %v289_v14 = vadd.f32 1.0, %v468_v13 }
 0x109   :  { %v470_v15 = vpop.eup %469 }
 0x10a   :  { %475 = vrcp.f32 %v289_v14  ;;  %v290_v17 = vadd.f32 1.0, %v470_v15  ;;  %v472_v18 = vpop.eup %471 }
 0x10b   :  { %v474_v19 = vpop.eup %473  ;;  %v324_v20 = vmul.f32 20.0, %v472_v18 }
 0x10c   :  { %477 = vrcp.f32 %v290_v17  ;;  %v325_v22 = vmul.f32 20.0, %v474_v19 }
 0x10d   :  { %v330_v24 = vsel %vm323_vm8, %v324_v20, %v327_v21 }
 0x10e   :  { %v331_v27 = vsel %vm323_vm8, %v325_v22, %v327_v21 }
 0x114   :  { %v476_v23 = vpop.eup %475 }
 0x115   :  { %v332_v25 = vmul.f32 %v476_v23, %v330_v24 }
 0x116   :  { %v478_v26 = vpop.eup %477 }
 0x117   :  { %v333_v28 = vmul.f32 %v478_v26, %v331_v27 }
 0x119   :  { %v361_v29 = vadd.f32 %v333_v28, %v332_v25 }
 0x11b   :  { %v362_v30 = vrot.slane %v361_v29, 4 }
 0x11d   :  { %v363_v31 = vadd.f32 %v362_v30, %v361_v29 }
 0x11f   :  { %v364_v32 = vrot.slane %v363_v31, 2 }
 0x121   :  { %v365_v33 = vadd.f32 %v364_v32, %v363_v31 }
 0x123   :  { %v366_v34 = vrot.slane %v365_v33, 1 }
 0x125   :  { %v367_v35 = vadd.f32 %v366_v34, %v365_v33 }
 0x127   :  { %368 = vst [vmem:[%s585_s2] sm:$0xff] %v367_v35 }

</bundles_post_ra>
